<compile_context>
chip_gen: v7x
topology: tpu7x:2x2x1
jax: 0.10.0
libtpu: 0.0.40
codegen_flags: <defaults>
</compile_context>

<pallas_src>
import jax
import jax.numpy as jnp
from jax.experimental import pallas as pl
from jax.experimental.pallas import tpu as pltpu


# ----------------------------- fused Pallas kernel -----------------------------

def _decoder_step_kernel(
    tok_ref,        # [B, 1]   int32   decoder input tokens
    h_ref,          # [B, H]           previous decoder hidden
    enc_ref,        # [B, S, 2E]       encoder outputs
    emb_tbl_ref,    # [V, De]          embedding table
    attn_wh_ref,    # [H, A]           attn weight (hidden slice, transposed)
    attn_we_ref,    # [2E, A]          attn weight (encoder slice, transposed)
    attn_b_ref,     # [1, A]
    wih_e_ref,      # [De, 3H]         GRU W_ih (embedding slice, transposed)
    wih_w_ref,      # [2E, 3H]         GRU W_ih (weighted-enc slice, transposed)
    whh_ref,        # [H, 3H]          GRU W_hh (transposed)
    b_ih_ref,       # [1, 3H]
    b_hh_ref,       # [1, 3H]
    fc_h_ref,       # [H, V]           fc weight (hidden slice, transposed)
    fc_wt_ref,      # [2E, V]          fc weight (weighted-enc slice, transposed)
    fc_e_ref,       # [De, V]          fc weight (embedding slice, transposed)
    fc_b_ref,       # [1, V]
    logits_ref,     # [B, V]  out
    h_new_ref,      # [B, H]  out
):
    f32 = jnp.float32
    h = h_ref[...]                                   # [B, H]
    enc = enc_ref[...]                               # [B, S, 2E]
    B, S, E2 = enc.shape
    H = h.shape[-1]
    V = emb_tbl_ref.shape[0]
    A = attn_b_ref.shape[-1]

    # 1) Embedding lookup as a one-hot matmul (keeps the gather on the MXU, in VMEM).
    tok = tok_ref[...]                                                        # [B, 1]
    onehot = (jax.lax.broadcasted_iota(jnp.int32, (B, V), 1) == tok).astype(f32)
    emb = jnp.dot(onehot, emb_tbl_ref[...], preferred_element_type=f32)       # [B, De]
    # eval-mode dropout == identity

    # 2) Concat attention: tanh([h ; enc] @ W_attn.T + b), bias folded into the h-term.
    e_h = jnp.dot(h, attn_wh_ref[...], preferred_element_type=f32) + attn_b_ref[...]   # [B, A]
    e_enc = jnp.dot(enc.reshape(B * S, E2), attn_we_ref[...],
                    preferred_element_type=f32).reshape(B, S, A)                        # [B, S, A]
    energy = jnp.tanh(e_enc + e_h[:, None, :])
    scores = jnp.sum(energy, axis=-1)                                                   # [B, S]
    scores = scores - jnp.max(scores, axis=-1, keepdims=True)
    p = jnp.exp(scores)
    a = p / jnp.sum(p, axis=-1, keepdims=True)                                          # softmax over S

    # 3) weighted = bmm(a, enc) as a batched MXU matmul (no [B, S, 2E] broadcast temp).
    weighted = jnp.einsum("bqs,bse->bqe", a[:, None, :], enc,
                          preferred_element_type=f32)[:, 0, :]                          # [B, 2E]

    # 4) GRU single step (PyTorch gate order r, z, n) with in-feature-split weights.
    gi = (jnp.dot(emb, wih_e_ref[...], preferred_element_type=f32)
          + jnp.dot(weighted, wih_w_ref[...], preferred_element_type=f32)
          + b_ih_ref[...])                                                              # [B, 3H]
    gh = jnp.dot(h, whh_ref[...], preferred_element_type=f32) + b_hh_ref[...]           # [B, 3H]
    r = jax.nn.sigmoid(gi[:, 0:H] + gh[:, 0:H])
    z = jax.nn.sigmoid(gi[:, H:2 * H] + gh[:, H:2 * H])
    n = jnp.tanh(gi[:, 2 * H:3 * H] + r * gh[:, 2 * H:3 * H])
    h_new = (1.0 - z) * n + z * h
    h_new_ref[...] = h_new

    # 5) Output projection with in-feature-split weights (no concat).
    logits_ref[...] = (jnp.dot(h_new, fc_h_ref[...], preferred_element_type=f32)
                       + jnp.dot(weighted, fc_wt_ref[...], preferred_element_type=f32)
                       + jnp.dot(emb, fc_e_ref[...], preferred_element_type=f32)
                       + fc_b_ref[...])


# ----------------------------- wrappers -----------------------------

def prepare_params(params):
    """One-time (outside jit) repack of PyTorch-layout weights into kernel layout:
    split along in-features (removes activation concats) and transpose to [in, out]
    (removes all in-kernel / per-step weight transposes)."""
    H = params["w_hh"].shape[1]
    De = params["embedding"].shape[1]
    E2 = params["attn_w"].shape[1] - H
    return {
        "emb_tbl":  params["embedding"],                 # [V, De]
        "attn_wh_t": params["attn_w"][:, :H].T,          # [H, A]   (concat order [h ; enc])
        "attn_we_t": params["attn_w"][:, H:].T,          # [2E, A]
        "attn_b":   params["attn_b"].reshape(1, -1),     # [1, A]
        "wih_e_t":  params["w_ih"][:, :De].T,            # [De, 3H] (rnn input [emb ; weighted])
        "wih_w_t":  params["w_ih"][:, De:].T,            # [2E, 3H]
        "whh_t":    params["w_hh"].T,                    # [H, 3H]
        "b_ih":     params["b_ih"].reshape(1, -1),       # [1, 3H]
        "b_hh":     params["b_hh"].reshape(1, -1),       # [1, 3H]
        "fc_h_t":   params["fc_w"][:, :H].T,             # [H, V]   (fc input [h_new ; weighted ; emb])
        "fc_w_t":   params["fc_w"][:, H:H + E2].T,       # [2E, V]
        "fc_e_t":   params["fc_w"][:, H + E2:].T,        # [De, V]
        "fc_b":     params["fc_b"].reshape(1, -1),       # [1, V]
    }


def simple_decoder_forward(prepared, tokens, dec_hidden, enc_outputs):
    """tokens:[B] int32, dec_hidden:[B,H], enc_outputs:[B,S,2E] -> (logits:[B,V], h_new:[B,H])"""
    B, S, E2 = enc_outputs.shape
    H = dec_hidden.shape[-1]
    V = prepared["fc_b"].shape[-1]

    def vmem():
        return pl.BlockSpec(memory_space=pltpu.MemorySpace.VMEM)

    logits, h_new = pl.pallas_call(
        _decoder_step_kernel,
        out_shape=(jax.ShapeDtypeStruct((B, V), jnp.float32),
                   jax.ShapeDtypeStruct((B, H), jnp.float32)),
        in_specs=[vmem() for _ in range(16)],
        out_specs=(vmem(), vmem()),
    )(
        tokens.reshape(B, 1).astype(jnp.int32),
        dec_hidden, enc_outputs,
        prepared["emb_tbl"],
        prepared["attn_wh_t"], prepared["attn_we_t"], prepared["attn_b"],
        prepared["wih_e_t"], prepared["wih_w_t"], prepared["whh_t"],
        prepared["b_ih"], prepared["b_hh"],
        prepared["fc_h_t"], prepared["fc_w_t"], prepared["fc_e_t"], prepared["fc_b"],
    )
    return logits, h_new


# ----------------------------- pure-JAX reference (sanity check) -----------------------------

def reference_forward(params, tokens, dec_hidden, enc_outputs):
    emb = params["embedding"][tokens]
    B, S, E2 = enc_outputs.shape
    H = dec_hidden.shape[-1]
    rep = jnp.repeat(dec_hidden[:, None, :], S, axis=1)
    energy = jnp.tanh(jnp.concatenate([rep, enc_outputs], -1)
                      @ params["attn_w"].T + params["attn_b"])
    a = jax.nn.softmax(energy.sum(-1), axis=-1)
    weighted = jnp.einsum("bs,bse->be", a, enc_outputs)
    x = jnp.concatenate([emb, weighted], -1)
    gi = x @ params["w_ih"].T + params["b_ih"]
    gh = dec_hidden @ params["w_hh"].T + params["b_hh"]
    r = jax.nn.sigmoid(gi[:, :H] + gh[:, :H])
    z = jax.nn.sigmoid(gi[:, H:2 * H] + gh[:, H:2 * H])
    n = jnp.tanh(gi[:, 2 * H:] + r * gh[:, 2 * H:])
    h_new = (1 - z) * n + z * dec_hidden
    fc_in = jnp.concatenate([h_new, weighted, emb], -1)
    logits = fc_in @ params["fc_w"].T + params["fc_b"]
    return logits, h_new


# ----------------------------- main -----------------------------

if __name__ == "__main__":
    # Small shapes consistent with the module's forward.
    B, S = 2, 8
    emb_dim = 16
    enc_hid_dim = 32          # encoder is bidirectional -> 2*enc_hid_dim features
    dec_hid_dim = 32
    attn_dim = 32
    output_dim = 64
    attn_input_dim = 2 * enc_hid_dim + dec_hid_dim   # 96
    fc_in_dim = attn_input_dim + emb_dim             # 112
    gru_in_dim = emb_dim + 2 * enc_hid_dim           # 80

    key = jax.random.PRNGKey(0)
    ks = jax.random.split(key, 12)

    def init(k, shape, scale=0.1):
        return (scale * jax.random.normal(k, shape)).astype(jnp.float32)

    params = {
        "embedding": init(ks[0], (output_dim, emb_dim)),
        "attn_w":    init(ks[1], (attn_dim, attn_input_dim)),
        "attn_b":    init(ks[2], (attn_dim,)),
        "w_ih":      init(ks[3], (3 * dec_hid_dim, gru_in_dim)),
        "w_hh":      init(ks[4], (3 * dec_hid_dim, dec_hid_dim)),
        "b_ih":      init(ks[5], (3 * dec_hid_dim,)),
        "b_hh":      init(ks[6], (3 * dec_hid_dim,)),
        "fc_w":      init(ks[7], (output_dim, fc_in_dim)),
        "fc_b":      init(ks[8], (output_dim,)),
    }

    tokens = jax.random.randint(ks[9], (B,), 0, output_dim, dtype=jnp.int32)
    dec_hidden = init(ks[10], (B, dec_hid_dim), scale=0.5)
    enc_outputs = init(ks[11], (B, S, 2 * enc_hid_dim), scale=0.5)

    prepared = prepare_params(params)     # one-time repack, outside jit

    fwd = jax.jit(simple_decoder_forward)
    logits, h_new = fwd(prepared, tokens, dec_hidden, enc_outputs)
    jax.block_until_ready((logits, h_new))

    ref_logits, ref_h = reference_forward(params, tokens, dec_hidden, enc_outputs)
    assert logits.shape == (B, output_dim) and h_new.shape == (B, dec_hid_dim)
    assert jnp.allclose(logits, ref_logits, rtol=1e-4, atol=1e-4)
    assert jnp.allclose(h_new, ref_h, rtol=1e-4, atol=1e-4)

    print("KERNEL_OK")
</pallas_src>

<mosaic_0001>
module attributes {stable_mosaic.version = 11 : i64} {
  func.func @_decoder_step_kernel(%arg0: memref<2x1xi32, #tpu.memory_space<vmem>>, %arg1: memref<2x32xf32, #tpu.memory_space<vmem>>, %arg2: memref<2x8x64xf32, #tpu.memory_space<vmem>>, %arg3: memref<64x16xf32, #tpu.memory_space<vmem>>, %arg4: memref<32x32xf32, #tpu.memory_space<vmem>>, %arg5: memref<64x32xf32, #tpu.memory_space<vmem>>, %arg6: memref<1x32xf32, #tpu.memory_space<vmem>>, %arg7: memref<16x96xf32, #tpu.memory_space<vmem>>, %arg8: memref<64x96xf32, #tpu.memory_space<vmem>>, %arg9: memref<32x96xf32, #tpu.memory_space<vmem>>, %arg10: memref<1x96xf32, #tpu.memory_space<vmem>>, %arg11: memref<1x96xf32, #tpu.memory_space<vmem>>, %arg12: memref<32x64xf32, #tpu.memory_space<vmem>>, %arg13: memref<64x64xf32, #tpu.memory_space<vmem>>, %arg14: memref<16x64xf32, #tpu.memory_space<vmem>>, %arg15: memref<1x64xf32, #tpu.memory_space<vmem>>, %arg16: memref<2x64xf32, #tpu.memory_space<vmem>>, %arg17: memref<2x32xf32, #tpu.memory_space<vmem>>) attributes {dimension_semantics = [], scalar_prefetch = 0 : i64, scratch_operands = 0 : i64, tpu.core_type = #tpu.core_type<tc>} {
    %c0 = arith.constant 0 : index
    %c0_0 = arith.constant 0 : index
    %0 = vector.load %arg1[%c0, %c0_0] : memref<2x32xf32, #tpu.memory_space<vmem>>, vector<2x32xf32>
    %c0_1 = arith.constant 0 : index
    %c0_2 = arith.constant 0 : index
    %c0_3 = arith.constant 0 : index
    %1 = vector.load %arg2[%c0_1, %c0_2, %c0_3] : memref<2x8x64xf32, #tpu.memory_space<vmem>>, vector<2x8x64xf32>
    %c0_4 = arith.constant 0 : index
    %c0_5 = arith.constant 0 : index
    %2 = vector.load %arg0[%c0_4, %c0_5] : memref<2x1xi32, #tpu.memory_space<vmem>>, vector<2x1xi32>
    %3 = tpu.iota {dimensions = array<i32: 1>} : vector<2x64xi32>
    %4 = vector.broadcast %2 : vector<2x1xi32> to vector<2x64xi32>
    %5 = arith.cmpi eq, %3, %4 : vector<2x64xi32>
    %6 = arith.extui %5 : vector<2x64xi1> to vector<2x64xi32>
    %7 = arith.sitofp %6 : vector<2x64xi32> to vector<2x64xf32>
    %c0_6 = arith.constant 0 : index
    %c0_7 = arith.constant 0 : index
    %8 = vector.load %arg3[%c0_6, %c0_7] : memref<64x16xf32, #tpu.memory_space<vmem>>, vector<64x16xf32>
    %cst = arith.constant dense<0.000000e+00> : vector<2x16xf32>
    %9 = tpu.matmul %7, %8, %cst {dimension_numbers = #tpu.dot_dimension_numbers<[1], [0], [0], [1], [0, 0, 1, 1], [], []>} : vector<2x64xf32>, vector<64x16xf32>, vector<2x16xf32> -> vector<2x16xf32>
    %c0_8 = arith.constant 0 : index
    %c0_9 = arith.constant 0 : index
    %10 = vector.load %arg4[%c0_8, %c0_9] : memref<32x32xf32, #tpu.memory_space<vmem>>, vector<32x32xf32>
    %cst_10 = arith.constant dense<0.000000e+00> : vector<2x32xf32>
    %11 = tpu.matmul %0, %10, %cst_10 {dimension_numbers = #tpu.dot_dimension_numbers<[1], [0], [0], [1], [0, 0, 1, 1], [], []>} : vector<2x32xf32>, vector<32x32xf32>, vector<2x32xf32> -> vector<2x32xf32>
    %c0_11 = arith.constant 0 : index
    %c0_12 = arith.constant 0 : index
    %12 = vector.load %arg6[%c0_11, %c0_12] : memref<1x32xf32, #tpu.memory_space<vmem>>, vector<1x32xf32>
    %13 = vector.broadcast %12 : vector<1x32xf32> to vector<2x32xf32>
    %14 = arith.addf %11, %13 : vector<2x32xf32>
    %15 = vector.shape_cast %1 : vector<2x8x64xf32> to vector<16x64xf32>
    %c0_13 = arith.constant 0 : index
    %c0_14 = arith.constant 0 : index
    %16 = vector.load %arg5[%c0_13, %c0_14] : memref<64x32xf32, #tpu.memory_space<vmem>>, vector<64x32xf32>
    %cst_15 = arith.constant dense<0.000000e+00> : vector<16x32xf32>
    %17 = tpu.matmul %15, %16, %cst_15 {dimension_numbers = #tpu.dot_dimension_numbers<[1], [0], [0], [1], [0, 0, 1, 1], [], []>} : vector<16x64xf32>, vector<64x32xf32>, vector<16x32xf32> -> vector<16x32xf32>
    %18 = vector.shape_cast %17 : vector<16x32xf32> to vector<2x8x32xf32>
    %19 = vector.shape_cast %14 : vector<2x32xf32> to vector<2x1x32xf32>
    %20 = vector.broadcast %19 : vector<2x1x32xf32> to vector<2x8x32xf32>
    %21 = arith.addf %18, %20 : vector<2x8x32xf32>
    %22 = math.tanh %21 : vector<2x8x32xf32>
    %cst_16 = arith.constant dense<0.000000e+00> : vector<2x8xf32>
    %23 = vector.multi_reduction <add>, %22, %cst_16 [2] : vector<2x8x32xf32> to vector<2x8xf32>
    %cst_17 = arith.constant dense<0xFF800000> : vector<2xf32>
    %24 = vector.multi_reduction <maximumf>, %23, %cst_17 [1] : vector<2x8xf32> to vector<2xf32>
    %25 = vector.shape_cast %24 : vector<2xf32> to vector<2x1xf32>
    %26 = vector.broadcast %25 : vector<2x1xf32> to vector<2x8xf32>
    %27 = arith.subf %23, %26 : vector<2x8xf32>
    %28 = math.exp %27 : vector<2x8xf32>
    %cst_18 = arith.constant dense<0.000000e+00> : vector<2xf32>
    %29 = vector.multi_reduction <add>, %28, %cst_18 [1] : vector<2x8xf32> to vector<2xf32>
    %30 = vector.shape_cast %29 : vector<2xf32> to vector<2x1xf32>
    %31 = vector.broadcast %30 : vector<2x1xf32> to vector<2x8xf32>
    %32 = arith.divf %28, %31 : vector<2x8xf32>
    %33 = vector.shape_cast %32 : vector<2x8xf32> to vector<2x1x8xf32>
    "tpu.trace_start"() <{level = 10 : i32, message = "bqs,bse->bqe"}> : () -> ()
    %cst_19 = arith.constant dense<0.000000e+00> : vector<2x1x64xf32>
    %34 = tpu.matmul %33, %1, %cst_19 {dimension_numbers = #tpu.dot_dimension_numbers<[2], [1], [1], [2], [0, 0, 0, 1, 1, 2], [0], [0]>} : vector<2x1x8xf32>, vector<2x8x64xf32>, vector<2x1x64xf32> -> vector<2x1x64xf32>
    "tpu.trace_stop"() : () -> ()
    %35 = vector.shape_cast %34 : vector<2x1x64xf32> to vector<2x64xf32>
    %c0_20 = arith.constant 0 : index
    %c0_21 = arith.constant 0 : index
    %36 = vector.load %arg7[%c0_20, %c0_21] : memref<16x96xf32, #tpu.memory_space<vmem>>, vector<16x96xf32>
    %cst_22 = arith.constant dense<0.000000e+00> : vector<2x96xf32>
    %37 = tpu.matmul %9, %36, %cst_22 {dimension_numbers = #tpu.dot_dimension_numbers<[1], [0], [0], [1], [0, 0, 1, 1], [], []>} : vector<2x16xf32>, vector<16x96xf32>, vector<2x96xf32> -> vector<2x96xf32>
    %c0_23 = arith.constant 0 : index
    %c0_24 = arith.constant 0 : index
    %38 = vector.load %arg8[%c0_23, %c0_24] : memref<64x96xf32, #tpu.memory_space<vmem>>, vector<64x96xf32>
    %cst_25 = arith.constant dense<0.000000e+00> : vector<2x96xf32>
    %39 = tpu.matmul %35, %38, %cst_25 {dimension_numbers = #tpu.dot_dimension_numbers<[1], [0], [0], [1], [0, 0, 1, 1], [], []>} : vector<2x64xf32>, vector<64x96xf32>, vector<2x96xf32> -> vector<2x96xf32>
    %40 = arith.addf %37, %39 : vector<2x96xf32>
    %c0_26 = arith.constant 0 : index
    %c0_27 = arith.constant 0 : index
    %41 = vector.load %arg10[%c0_26, %c0_27] : memref<1x96xf32, #tpu.memory_space<vmem>>, vector<1x96xf32>
    %42 = vector.broadcast %41 : vector<1x96xf32> to vector<2x96xf32>
    %43 = arith.addf %40, %42 : vector<2x96xf32>
    %c0_28 = arith.constant 0 : index
    %c0_29 = arith.constant 0 : index
    %44 = vector.load %arg9[%c0_28, %c0_29] : memref<32x96xf32, #tpu.memory_space<vmem>>, vector<32x96xf32>
    %cst_30 = arith.constant dense<0.000000e+00> : vector<2x96xf32>
    %45 = tpu.matmul %0, %44, %cst_30 {dimension_numbers = #tpu.dot_dimension_numbers<[1], [0], [0], [1], [0, 0, 1, 1], [], []>} : vector<2x32xf32>, vector<32x96xf32>, vector<2x96xf32> -> vector<2x96xf32>
    %c0_31 = arith.constant 0 : index
    %c0_32 = arith.constant 0 : index
    %46 = vector.load %arg11[%c0_31, %c0_32] : memref<1x96xf32, #tpu.memory_space<vmem>>, vector<1x96xf32>
    %47 = vector.broadcast %46 : vector<1x96xf32> to vector<2x96xf32>
    %48 = arith.addf %45, %47 : vector<2x96xf32>
    %49 = vector.extract_strided_slice %43 {offsets = [0, 0], sizes = [2, 32], strides = [1, 1]} : vector<2x96xf32> to vector<2x32xf32>
    %50 = vector.extract_strided_slice %48 {offsets = [0, 0], sizes = [2, 32], strides = [1, 1]} : vector<2x96xf32> to vector<2x32xf32>
    %51 = arith.addf %49, %50 : vector<2x32xf32>
    %52 = arith.negf %51 : vector<2x32xf32>
    %53 = math.exp %52 : vector<2x32xf32>
    %cst_33 = arith.constant 1.000000e+00 : f32
    %54 = vector.broadcast %cst_33 : f32 to vector<2x32xf32>
    %55 = arith.addf %54, %53 : vector<2x32xf32>
    %56 = arith.divf %54, %55 : vector<2x32xf32>
    %57 = vector.extract_strided_slice %43 {offsets = [0, 32], sizes = [2, 32], strides = [1, 1]} : vector<2x96xf32> to vector<2x32xf32>
    %58 = vector.extract_strided_slice %48 {offsets = [0, 32], sizes = [2, 32], strides = [1, 1]} : vector<2x96xf32> to vector<2x32xf32>
    %59 = arith.addf %57, %58 : vector<2x32xf32>
    %60 = arith.negf %59 : vector<2x32xf32>
    %61 = math.exp %60 : vector<2x32xf32>
    %cst_34 = arith.constant 1.000000e+00 : f32
    %62 = vector.broadcast %cst_34 : f32 to vector<2x32xf32>
    %63 = arith.addf %62, %61 : vector<2x32xf32>
    %64 = arith.divf %62, %63 : vector<2x32xf32>
    %65 = vector.extract_strided_slice %43 {offsets = [0, 64], sizes = [2, 32], strides = [1, 1]} : vector<2x96xf32> to vector<2x32xf32>
    %66 = vector.extract_strided_slice %48 {offsets = [0, 64], sizes = [2, 32], strides = [1, 1]} : vector<2x96xf32> to vector<2x32xf32>
    %67 = arith.mulf %56, %66 : vector<2x32xf32>
    %68 = arith.addf %65, %67 : vector<2x32xf32>
    %69 = math.tanh %68 : vector<2x32xf32>
    %cst_35 = arith.constant 1.000000e+00 : f32
    %70 = vector.broadcast %cst_35 : f32 to vector<2x32xf32>
    %71 = arith.subf %70, %64 : vector<2x32xf32>
    %72 = arith.mulf %71, %69 : vector<2x32xf32>
    %73 = arith.mulf %64, %0 : vector<2x32xf32>
    %74 = arith.addf %72, %73 : vector<2x32xf32>
    %c0_36 = arith.constant 0 : index
    %c0_37 = arith.constant 0 : index
    %75 = vector.load %arg17[%c0_36, %c0_37] : memref<2x32xf32, #tpu.memory_space<vmem>>, vector<2x32xf32>
    tpu.vector_store %arg17[%c0_36, %c0_37], %74 {strides = array<i32>} : memref<2x32xf32, #tpu.memory_space<vmem>>, vector<2x32xf32>,
    %c0_38 = arith.constant 0 : index
    %c0_39 = arith.constant 0 : index
    %76 = vector.load %arg12[%c0_38, %c0_39] : memref<32x64xf32, #tpu.memory_space<vmem>>, vector<32x64xf32>
    %cst_40 = arith.constant dense<0.000000e+00> : vector<2x64xf32>
    %77 = tpu.matmul %74, %76, %cst_40 {dimension_numbers = #tpu.dot_dimension_numbers<[1], [0], [0], [1], [0, 0, 1, 1], [], []>} : vector<2x32xf32>, vector<32x64xf32>, vector<2x64xf32> -> vector<2x64xf32>
    %c0_41 = arith.constant 0 : index
    %c0_42 = arith.constant 0 : index
    %78 = vector.load %arg13[%c0_41, %c0_42] : memref<64x64xf32, #tpu.memory_space<vmem>>, vector<64x64xf32>
    %cst_43 = arith.constant dense<0.000000e+00> : vector<2x64xf32>
    %79 = tpu.matmul %35, %78, %cst_43 {dimension_numbers = #tpu.dot_dimension_numbers<[1], [0], [0], [1], [0, 0, 1, 1], [], []>} : vector<2x64xf32>, vector<64x64xf32>, vector<2x64xf32> -> vector<2x64xf32>
    %80 = arith.addf %77, %79 : vector<2x64xf32>
    %c0_44 = arith.constant 0 : index
    %c0_45 = arith.constant 0 : index
    %81 = vector.load %arg14[%c0_44, %c0_45] : memref<16x64xf32, #tpu.memory_space<vmem>>, vector<16x64xf32>
    %cst_46 = arith.constant dense<0.000000e+00> : vector<2x64xf32>
    %82 = tpu.matmul %9, %81, %cst_46 {dimension_numbers = #tpu.dot_dimension_numbers<[1], [0], [0], [1], [0, 0, 1, 1], [], []>} : vector<2x16xf32>, vector<16x64xf32>, vector<2x64xf32> -> vector<2x64xf32>
    %83 = arith.addf %80, %82 : vector<2x64xf32>
    %c0_47 = arith.constant 0 : index
    %c0_48 = arith.constant 0 : index
    %84 = vector.load %arg15[%c0_47, %c0_48] : memref<1x64xf32, #tpu.memory_space<vmem>>, vector<1x64xf32>
    %85 = vector.broadcast %84 : vector<1x64xf32> to vector<2x64xf32>
    %86 = arith.addf %83, %85 : vector<2x64xf32>
    %c0_49 = arith.constant 0 : index
    %c0_50 = arith.constant 0 : index
    %87 = vector.load %arg16[%c0_49, %c0_50] : memref<2x64xf32, #tpu.memory_space<vmem>>, vector<2x64xf32>
    tpu.vector_store %arg16[%c0_49, %c0_50], %86 {strides = array<i32>} : memref<2x64xf32, #tpu.memory_space<vmem>>, vector<2x64xf32>,
    return
  }
}

</mosaic_0001>

<bundles_post_ra>
// kernel: simple_decoder_forward.1
= control target key start
LH: loop header
LB: loop body
LE: loop exit
PB: predicated region body
PF: predicated region fallthrough
CT: control target
= control target key end

     0   :  { %s2141_s0 = inlined_call_operand.vmem [shape: s32[2,1], index: 0, kind: input, shape index: {}]   ;;  %s2142_s1 = inlined_call_operand.vmem [shape: f32[2,32], index: 1, kind: input, shape index: {}]   ;;  %s2143_s2 = inlined_call_operand.vmem [shape: f32[2,8,64], index: 2, kind: input, shape index: {}]   ;;  %s2144_s3 = inlined_call_operand.vmem [shape: f32[64,16], index: 3, kind: input, shape index: {}]   ;;  %s2145_s4 = inlined_call_operand.vmem [shape: f32[32,32], index: 4, kind: input, shape index: {}]   ;;  %s2146_s5 = inlined_call_operand.vmem [shape: f32[64,32], index: 5, kind: input, shape index: {}]   ;;  %s2147_s6 = inlined_call_operand.vmem [shape: f32[1,32], index: 6, kind: input, shape index: {}]   ;;  %s2148_s7 = inlined_call_operand.vmem [shape: f32[16,96], index: 7, kind: input, shape index: {}]   ;;  %s2149_s8 = inlined_call_operand.vmem [shape: f32[64,96], index: 8, kind: input, shape index: {}]   ;;  %s2150_s9 = inlined_call_operand.vmem [shape: f32[32,96], index: 9, kind: input, shape index: {}]   ;;  %s2151_s10 = inlined_call_operand.hbm [shape: f32[1,96], index: 10, kind: input, shape index: {}]   ;;  %s2152_s11 = inlined_call_operand.hbm [shape: f32[1,96], index: 11, kind: input, shape index: {}]   ;;  %s2153_s12 = inlined_call_operand.hbm [shape: f32[32,64], index: 12, kind: input, shape index: {}]   ;;  %s2154_s13 = inlined_call_operand.vmem [shape: f32[64,64], index: 13, kind: input, shape index: {}]   ;;  %s2155_s14 = inlined_call_operand.hbm [shape: f32[16,64], index: 14, kind: input, shape index: {}]   ;;  %s2156_s15 = inlined_call_operand.hbm [shape: f32[1,64], index: 15, kind: input, shape index: {}]   ;;  %s2157_s16 = inlined_call_operand.hbm [shape: f32[2,64], index: 16, kind: output, shape index: {0}]   ;;  %s2158_s17 = inlined_call_operand.hbm [shape: f32[2,32], index: 17, kind: output, shape index: {1}]  }
   0x1   :  { %2159 = sst [smem:[#allocation19_spill]] %s2141_s0 }
   0x2   :  { %2160 = sst [smem:[#allocation20_spill]] %s2142_s1 }
   0x3   :  { %23 = vsyncpa [#allocation3], 0 }
   0x4   :  { %24 = vsyncpa [#allocation6], 0 }
   0x5   :  { %25 = vsyncpa [#allocation9], 0 }
   0x6   :  { %26 = vsyncpa [#allocation4], 0 }
   0x7   :  { %27 = vsyncpa [#allocation13], 0  ;;  %s1703_s24 = smov [#allocation5]   ;;  %s1539_s28 = scalar_lea.hbm %s2152_s11, 16 }
   0x8   :  { %s64_s25 = sshll.u32 %s1703_s24, 4  ;;  %p1540_p0 = scmp.ne.s32.totalorder %s2152_s11, %s1539_s28  ;;  %s65_s25 = int_to_ptr.vmem [resolvable:$true] %s64_s25 }
   0x9   :  { %p1543_p1 = scmp.lt.u32.totalorder %s1539_s28, %s2152_s11 }
   0xb   :  { %p1545_p2 = pnand %p1543_p1, %p1540_p0 }
   0xd   :  { %1548 = shalt.err (!%p1545_p2)
}
   0xe   :  { %s1549_s19 = scalar_lea.vmem %s65_s25, 16  ;;  %s1553_s1 = scalar_lea.vmem %s65_s25, 32 }
   0xf   :  { %p1550_p3 = scmp.ne.s32.totalorder %s65_s25, %s1549_s19  ;;  %p1554_p4 = scmp.lt.s32.totalorder %s65_s25, %s65_s25 }
  0x10   :  { %p1555_p5 = scmp.lt.s32.totalorder %s1553_s1, %s1549_s19 }
  0x12   :  { %p1556_p6 = por %p1555_p5, %p1554_p4 }
  0x14   :  { %p1557_p7 = pnand %p1556_p6, %p1550_p3 }
  0x16   :  { %1560 = shalt.err (!%p1557_p7)
}
  0x17   :  { %67 = dma.hbm_to_vmem [thread:$0]  %s2152_s11, 16, %s65_s25, [#allocation6]  }
  0x18   :  { %s1704_s22 = smov [#allocation8]   ;;  %s1705_s24 = smov [#allocation2]  }
  0x19   :  { %s87_s23 = sshll.u32 %s1704_s22, 4  ;;  %s54_s26 = sshll.u32 %s1705_s24, 4  ;;  %s88_s23 = int_to_ptr.vmem [resolvable:$true] %s87_s23  ;;  %s55_s26 = int_to_ptr.vmem [resolvable:$true] %s54_s26 }
  0x1a   :  { %s1561_s29 = scalar_lea.hbm %s2155_s14, 256 }
  0x1b   :  { %p1562_p8 = scmp.ne.s32.totalorder %s2155_s14, %s1561_s29  ;;  %p1565_p9 = scmp.lt.u32.totalorder %s1561_s29, %s2155_s14 }
  0x1d   :  { %p1567_p10 = pnand %p1565_p9, %p1562_p8 }
  0x1f   :  { %1570 = shalt.err (!%p1567_p10)
}
  0x20   :  { %s1571_s11 = scalar_lea.vmem %s88_s23, 256  ;;  %p1576_p12 = scmp.lt.s32.totalorder %s88_s23, %s88_s23 }
  0x21   :  { %p1572_p11 = scmp.ne.s32.totalorder %s88_s23, %s1571_s11  ;;  %p1577_p13 = scmp.lt.s32.totalorder %s1571_s11, %s1571_s11 }
  0x23   :  { %p1578_p0 = por %p1577_p13, %p1576_p12 }
  0x25   :  { %p1579_p1 = pnand %p1578_p0, %p1572_p11 }
  0x27   :  { %1582 = shalt.err (!%p1579_p1)
}
  0x28   :  { %s1706_s25 = smov 128   ;;  %s1707_s1 = smov 8  }
  0x29   :  { %93 = dma.hbm_to_vmem [thread:$0]  %s2155_s14, 256, %s88_s23, [#allocation9], %s1706_s25, %s1706_s25, %s1707_s1  }
  0x2a   :  { %s1583_s27 = scalar_lea.hbm %s2151_s10, 16 }
  0x2b   :  { %p1584_p2 = scmp.ne.s32.totalorder %s2151_s10, %s1583_s27  ;;  %p1587_p3 = scmp.lt.u32.totalorder %s1583_s27, %s2151_s10 }
  0x2d   :  { %p1589_p4 = pnand %p1587_p3, %p1584_p2 }
  0x2f   :  { %1592 = shalt.err (!%p1589_p4)
}
  0x30   :  { %s1593_s18 = scalar_lea.vmem %s55_s26, 16  ;;  %s1597_s19 = scalar_lea.vmem %s55_s26, 32 }
  0x31   :  { %p1594_p5 = scmp.ne.s32.totalorder %s55_s26, %s1593_s18  ;;  %p1598_p6 = scmp.lt.s32.totalorder %s55_s26, %s55_s26 }
  0x32   :  { %p1599_p7 = scmp.lt.s32.totalorder %s1597_s19, %s1593_s18 }
  0x34   :  { %p1600_p8 = por %p1599_p7, %p1598_p6 }
  0x36   :  { %p1601_p9 = pnand %p1600_p8, %p1594_p5 }
  0x38   :  { %1604 = shalt.err (!%p1601_p9)
}
  0x39   :  { %57 = dma.hbm_to_vmem [thread:$0]  %s2151_s10, 16, %s55_s26, [#allocation3]  }
  0x3a   :  { %s1708_s11 = smov [#allocation7]   ;;  %s1709_s21 = smov [#allocation10]  }
  0x3b   :  { %s73_s20 = sshll.u32 %s1708_s11, 4  ;;  %s100_s22 = sshll.u32 %s1709_s21, 4  ;;  %s74_s20 = int_to_ptr.vmem [resolvable:$true] %s73_s20  ;;  %s101_s22 = int_to_ptr.vmem [resolvable:$true] %s100_s22 }
  0x3c   :  { %s1605_s28 = scalar_lea.hbm %s2153_s12, 512 }
  0x3d   :  { %p1606_p10 = scmp.ne.s32.totalorder %s2153_s12, %s1605_s28  ;;  %p1609_p11 = scmp.lt.u32.totalorder %s1605_s28, %s2153_s12 }
  0x3f   :  { %p1611_p12 = pnand %p1609_p11, %p1606_p10 }
  0x41   :  { %1614 = shalt.err (!%p1611_p12)
}
  0x42   :  { %s1615_s10 = scalar_lea.vmem %s74_s20, 512  ;;  %p1620_p0 = scmp.lt.s32.totalorder %s74_s20, %s74_s20 }
  0x43   :  { %p1616_p13 = scmp.ne.s32.totalorder %s74_s20, %s1615_s10  ;;  %p1621_p1 = scmp.lt.s32.totalorder %s1615_s10, %s1615_s10 }
  0x45   :  { %p1622_p2 = por %p1621_p1, %p1620_p0 }
  0x47   :  { %p1623_p3 = pnand %p1622_p2, %p1616_p13 }
  0x49   :  { %1626 = shalt.err (!%p1623_p3)
}
  0x4a   :  { %79 = dma.hbm_to_vmem [thread:$0]  %s2153_s12, 512, %s74_s20, [#allocation6], %s1706_s25, %s1706_s25, %s1707_s1  }
  0x4b   :  { %s1627_s11 = scalar_lea.hbm %s2156_s15, 16 }
  0x4c   :  { %p1628_p4 = scmp.ne.s32.totalorder %s2156_s15, %s1627_s11  ;;  %p1631_p5 = scmp.lt.u32.totalorder %s1627_s11, %s2156_s15 }
  0x4e   :  { %p1633_p6 = pnand %p1631_p5, %p1628_p4 }
  0x50   :  { %1636 = shalt.err (!%p1633_p6)
}
  0x51   :  { %s1637_s29 = scalar_lea.vmem %s101_s22, 16  ;;  %s1641_s0 = scalar_lea.vmem %s101_s22, 32 }
  0x52   :  { %p1638_p7 = scmp.ne.s32.totalorder %s101_s22, %s1637_s29  ;;  %p1642_p8 = scmp.lt.s32.totalorder %s101_s22, %s101_s22 }
  0x53   :  { %p1643_p9 = scmp.lt.s32.totalorder %s1641_s0, %s1637_s29 }
  0x55   :  { %p1644_p10 = por %p1643_p9, %p1642_p8 }
  0x57   :  { %p1645_p11 = pnand %p1644_p10, %p1638_p7 }
  0x59   :  { %1648 = shalt.err (!%p1645_p11)
}
  0x5a   :  { %103 = dma.hbm_to_vmem [thread:$0]  %s2156_s15, 16, %s101_s22, [#allocation9]  }
  0x5b   :  { %1693 = dma.done.wait [#allocation3], 16  }
  0x5c   :  { %1694 = vsyncadd [#allocation3], 4294967280 }
  0x5d   :  { %1695 = dma.done.wait [#allocation6], 528  }
  0x5e   :  { %1696 = vsyncadd [#allocation6], 4294966768 }
  0x5f   :  { %1697 = dma.done.wait [#allocation9], 272  }
  0x60   :  { %1698 = vsyncadd [#allocation9], 4294967024  ;;  %v1710_v0 = vmov 0.0|0.0   ;;  %vm1711_vm0 = vmmov 0   ;;  %v1712_v1 = vmov 0.0   ;;  %v213_v2 = vld [vmem:[%s2145_s4] sm:$0xff]  ;;  %v123_v23 = vlaneseq }
  0x61   :  { %1438 = vmatprep.subr.bf16.mxu1 %v1710_v0  ;;  %1320 = vmatprep.mubr.msk.f32.mxu1 %vm1711_vm0, %v1712_v1  ;;  %v214_v3 = vld [vmem:[%s2145_s4 + $0x8] sm:$0xff]  ;;  %v215_v4 = vld [vmem:[%s2145_s4 + $0x10] sm:$0xff]  ;;  %v216_v6 = vld [vmem:[%s2145_s4 + $0x18] sm:$0xff]  ;;  %s2161_s0 = sld [smem:[#allocation20_spill]]  ;;  %vm224_vm1 = vcmask 261120   ;;  %vm139_vm2 = vcmask 523264  }
  0x62   :  { %1426 = vmatprep.subr.bf16.mxu0 %v1710_v0  ;;  %1309 = vmatprep.mubr.msk.f32.mxu0 %vm1711_vm0, %v1712_v1  ;;  %v1439_v5 = vpack.c.bf16 %v214_v3, %v213_v2  ;;  %v298_v7 = vld [vmem:[%s2146_s5] sm:$0xff]  ;;  %v299_v8 = vld [vmem:[%s2146_s5 + $0x8] sm:$0xff]  ;;  %v1442_v9 = vpack.c.bf16 %v216_v6, %v215_v4  ;;  %v300_v11 = vld [vmem:[%s2146_s5 + $0x10] sm:$0xff]  ;;  %v1713_v24 = vmov 1966171168   ;;  %v1943_v27 = vshrl.u32 %v123_v23, 7 }
  0x63   :  { %v1444_v10 = vpack.c.bf16 %v299_v8, %v298_v7  ;;  %v301_v12 = vld [vmem:[%s2146_s5 + $0x18] sm:$0xff]  ;;  %v1915_v15 = vld [vmem:[%s2143_s2] sm:$0xff]  ;;  %v303_v17 = vld [vmem:[%s2146_s5 + $0x28] sm:$0xff]  ;;  %v389_v25 = vunpack.c.l.s4 %v1713_v24  ;;  %v124_v48 = vand.u32 127, %v123_v23  ;;  %vm440_vm3 = vcmask 1041409   ;;  %s2162_s10 = sld [smem:[#allocation19_spill]] }
  0x64   :  { %1440 = vmatpush3.bf16.msra.mxu1 %v1439_v5  ;;  %v1448_v14 = vpack.c.bf16 %v301_v12, %v300_v11  ;;  %v302_v16 = vld [vmem:[%s2146_s5 + $0x20] sm:$0xff]  ;;  %v304_v19 = vld [vmem:[%s2146_s5 + $0x30] sm:$0xff]  ;;  %v305_v20 = vld [vmem:[%s2146_s5 + $0x38] sm:$0xff]  ;;  %v1950_v36 = vsub.s32 0, %v1943_v27  ;;  %vm443_vm4 = vcmask 58368   ;;  %v1714_v56 = vmov 0  }
  0x65   :  { %1441 = vmatprep.subr.bf16.mxu1 %v1710_v0  ;;  %v1452_v18 = vpack.c.bf16 %v303_v17, %v302_v16  ;;  %v1456_v21 = vpack.c.bf16 %v305_v20, %v304_v19  ;;  %v1936_v22 = vld [vmem:[%s2143_s2 + $0x8] sm:$0xff]  ;;  %v390_v26 = vunpack.c.0.s8 %v389_v25  ;;  %v1215_v28 = vld [vmem:[%s2147_s6] ss:$0 sm:$0xff]  ;;  %v1957_v50 = vsub.s32 %v124_v48, %v1943_v27  ;;  %1520 = vset.pattern.permute.xlu0 %v1714_v56  ;;  %v133_v59 = vld [vmem:[%s2144_s3 + $0x10] sm:$0xff]  ;;  %s1718_s12 = smov [#allocation12]  }
  0x66   :  { %1519 = vset.pattern.permute.xlu1 %v1714_v56  ;;  %v131_v57 = vld [vmem:[%s2144_s3] sm:$0xff]  ;;  %v132_v58 = vld [vmem:[%s2144_s3 + $0x8] sm:$0xff]  ;;  %v134_v61 = vld [vmem:[%s2144_s3 + $0x18] sm:$0xff]  ;;  %v454_v4 = vsub.s32 1, %v1943_v27  ;;  %vm747_vm6 = vcmask 130048   ;;  %vm508_vm7 = vcmask 64512  }
  0x67   :  { %v1910_v13 = vld [vmem:[%s2161_s0] sm:$0x3]  ;;  %v393_v29 = vsub.s32 %v390_v26, %v1943_v27  ;;  %v1427_v60 = vpack.c.bf16 %v132_v58, %v131_v57  ;;  %v1430_v62 = vpack.c.bf16 %v134_v61, %v133_v59  ;;  %v136_v2 = vld [vmem:[%s2144_s3 + $0x28] sm:$0xff]  ;;  %v137_v16 = vld [vmem:[%s2144_s3 + $0x30] sm:$0xff]  ;;  %s1717_s0 = smov 32   ;;  %vm943_vm8 = vcmask 254976  }
  0x68   :  { %1443 = vmatpush3.bf16.msra.mxu1 %v1442_v9  ;;  %v135_v63 = vld [vmem:[%s2144_s3 + $0x20] sm:$0xff]  ;;  %v138_v17 = vld [vmem:[%s2144_s3 + $0x38] sm:$0xff]  ;;  %v951_v57 = vld [vmem:[%s2154_s13 + $0x10] sm:$0xff]  ;;  %s1198_s25 = sshll.u32 %s1718_s12, 4  ;;  %s1199_s25 = int_to_ptr.vmem [resolvable:$true] %s1198_s25 }
  0x69   :  { %1445 = vmatprep.subr.bf16.mxu1 %v1444_v10  ;;  %1428 = vmatpush3.bf16.msra.mxu0 %v1427_v60  ;;  %v1433_v3 = vpack.c.bf16 %v136_v2, %v135_v63  ;;  %v1436_v19 = vpack.c.bf16 %v138_v17, %v137_v16  ;;  %v952_v58 = vld [vmem:[%s2154_s13 + $0x18] sm:$0xff]  ;;  %v667_v61 = vld [vmem:[%s2149_s8 + $0x20] sm:$0xff]  ;;  %s1649_s15 = scalar_lea.vmem %s1199_s25, 32  ;;  %p1654_p13 = scmp.lt.s32.totalorder %s1199_s25, %s1199_s25 }
  0x6a   :  { %1429 = vmatprep.subr.bf16.mxu0 %v1710_v0  ;;  %v1485_v60 = vpack.c.bf16 %v952_v58, %v951_v57  ;;  %v953_v63 = vld [vmem:[%s2154_s13 + $0x20] sm:$0xff]  ;;  %p1650_p12 = scmp.ne.s32.totalorder %s1199_s25, %s1649_s15  ;;  %p1655_p0 = scmp.lt.s32.totalorder %s1649_s15, %s1649_s15 }
  0x6b   :  { %1321 = vmatmul.mubr.msk.f32.vlgmr.msra.gmra.mrb[0].mxu1 %vm224_vm1, %v1910_v13 }
  0x6c   :  { %1447 = vmatpush3.bf16.msra.mxu1 %v1444_v10  ;;  %1339 = vmatprep.mubr.msk.f32.mxu1 %vm139_vm2, %v1915_v15  ;;  %p1656_p1 = por %p1655_p0, %p1654_p13 }
  0x6d   :  { %1449 = vmatprep.subr.bf16.mxu1 %v1448_v14  ;;  %1431 = vmatpush3.bf16.msra.mxu0 %v1430_v62  ;;  %v668_v62 = vld [vmem:[%s2149_s8 + $0x28] sm:$0xff] }
  0x6e   :  { %1432 = vmatprep.subr.bf16.mxu0 %v1710_v0  ;;  %v1467_v2 = vpack.c.bf16 %v668_v62, %v667_v61  ;;  %p1657_p2 = pnand %p1656_p1, %p1650_p12 }
  0x70   :  { %1451 = vmatpush3.bf16.msra.mxu1 %v1448_v14 }
  0x71   :  { %1453 = vmatprep.subr.bf16.mxu1 %v1452_v18  ;;  %1434 = vmatpush3.bf16.msra.mxu0 %v1433_v3  ;;  %v954_v3 = vld [vmem:[%s2154_s13 + $0x28] sm:$0xff] }
  0x72   :  { %1435 = vmatprep.subr.bf16.mxu0 %v1710_v0 }
  0x74   :  { %1455 = vmatpush3.bf16.msra.mxu1 %v1452_v18  ;;  %v122_v18 = vld [vmem:[%s2162_s10] sm:$0x3] }
  0x75   :  { %1457 = vmatprep.subr.bf16.mxu1 %v1456_v21  ;;  %1437 = vmatpush3.bf16.msra.mxu0 %v1436_v19 }
  0x76   :  { %1342 = vmatprep.subr.mxu0 %v1712_v1 }
  0x78   :  { %1459 = vmatpush3.bf16.msra.mxu1 %v1456_v21 }
  0x79   :  { %1472 = vmatprep.subr.bf16.mxu1 %v1710_v0 }
  0x7b   :  { %1340 = vmatmul.mubr.msk.f32.vlgmr.msra.gmra.mrb[2].mxu1 %vm139_vm2, %v1936_v22 }
  0x7c   :  { %1375 = vmatprep.mubr.msk.f32.mxu1 %vm1711_vm0, %v1712_v1 }
 0x13e   :  { %v294_v30 = vpop.f32.mrb[0].mxu1 }
 0x13f   :  { %v295_v31 = vadd.f32 %v1215_v28, %v294_v30  ;;  %v1322_v32 = vpop.f32.mrb[1].mxu1  ;;  %v662_v30 = vld [vmem:[%s2148_s7 + $0x8] sm:$0xff] }
 0x141   :  { %v394_v33 = vrot.slane %v295_v31, %v393_v29 }
 0x143   :  { %v395_v34 = vcombine.high %v394_v33, %v394_v33  ;;  %v402_v37 = vrot.slane %v394_v33, %v393_v29 }
 0x145   :  { %v409_v35 = vrot.slane %v395_v34, %v393_v29  ;;  %v413_v40 = vrot.slane %v402_v37, %v1950_v36  ;;  %v661_v29 = vld [vmem:[%s2148_s7] sm:$0xff] }
 0x146   :  { %v1473_v31 = vpack.c.bf16 %v662_v30, %v661_v29 }
 0x147   :  { %v417_v38 = vrot.slane %v409_v35, %v1950_v36 }
 0x148   :  { %1474 = vmatpush3.bf16.msra.mxu1 %v1473_v31 }
 0x149   :  { %1475 = vmatprep.subr.bf16.mxu1 %v1710_v0 }
 0x14e   :  { %v1341_v39 = vpop.f32.mrb[2].mxu1 }
 0x14f   :  { %v421_v41 = vadd.f32 %v1341_v39, %v417_v38  ;;  %v378_v42 = vpop.f32.mrb[3].mxu1  ;;  %v829_v39 = vld [vmem:[%s2150_s9] sm:$0xff] }
 0x150   :  { %v420_v43 = vadd.f32 %v413_v40, %v378_v42  ;;  %v830_v40 = vld [vmem:[%s2150_s9 + $0x8] sm:$0xff]  ;;  %v832_v42 = vld [vmem:[%s2150_s9 + $0x18] sm:$0xff] }
 0x152   :  { %1521 = vtanh.f32 %v420_v43 }
 0x153   :  { %1523 = vtanh.f32 %v421_v41  ;;  %v1476_v41 = vpack.c.bf16 %v830_v40, %v829_v39 }
 0x15c   :  { %v1522_v44 = vpop.eup %1521 }
 0x15d   :  { %v424_v45 = vsel %vm224_vm1, %v1522_v44, 0.0  ;;  %v1524_v46 = vpop.eup %1523 }
 0x15e   :  { %425 = vadd.xlane.f32.xlu0 %v424_v45  ;;  %v427_v47 = vsel %vm224_vm1, %v1524_v46, 0.0 }
 0x162   :  { %428 = vadd.xlane.f32.xlu0 %v427_v47 }
 0x1eb   :  { %v426_v49 = vpop.xlane.xlu0 %425 }
 0x1ec   :  { %v435_v52 = vrot.slane %v426_v49, %v1957_v50 }
 0x1ef   :  { %v429_v51 = vpop.xlane.xlu0 %428 }
 0x1f0   :  { %v439_v53 = vrot.slane %v429_v51, %v1957_v50 }
 0x1f2   :  { %v441_v54 = vsel %vm440_vm3, %v439_v53, %v435_v52  ;;  %v664_v52 = vld [vmem:[%s2149_s8 + $0x8] sm:$0xff] }
 0x1f3   :  { %v444_v55 = vsel %vm443_vm4, %v441_v54, -inf  ;;  %v665_v54 = vld [vmem:[%s2149_s8 + $0x10] sm:$0xff] }
 0x1f4   :  { %445 = vmax.xlane.f32.xlu1 %v444_v55  ;;  %v666_v55 = vld [vmem:[%s2149_s8 + $0x18] sm:$0xff] }
 0x1f5   :  { %v1464_v59 = vpack.c.bf16 %v666_v55, %v665_v54  ;;  %v1099_v54 = vld [vmem:[#allocation8] sm:$0xff]  ;;  %v1100_v55 = vld [vmem:[#allocation8 + $0x8] sm:$0xff] }
 0x281   :  { %v446_v5 = vpop.xlane.xlu1 %445 }
 0x282   :  { %v451_v6 = vrot.slane %v446_v5, %v1950_v36  ;;  %v455_v7 = vrot.slane %v446_v5, %v454_v4  ;;  %v669_v5 = vld [vmem:[%s2149_s8 + $0x30] sm:$0xff] }
 0x284   :  { %v458_v8 = vsub.f32 %v426_v49, %v451_v6  ;;  %v459_v9 = vsub.f32 %v429_v51, %v455_v7  ;;  %v663_v51 = vld [vmem:[%s2149_s8] sm:$0xff]  ;;  %v670_v6 = vld [vmem:[%s2149_s8 + $0x38] sm:$0xff]  ;;  %v955_v7 = vld [vmem:[%s2154_s13 + $0x30] sm:$0xff]  ;;  %s1715_s8 = smov 64  }
 0x285   :  { %v1461_v53 = vpack.c.bf16 %v664_v52, %v663_v51 }
 0x286   :  { %v460_v10 = vmul.f32 1.442695, %v458_v8  ;;  %v462_v11 = vmul.f32 1.442695, %v459_v9  ;;  %v1470_v8 = vpack.c.bf16 %v670_v6, %v669_v5  ;;  %v956_v9 = vld [vmem:[%s2154_s13 + $0x38] sm:$0xff] }
 0x288   :  { %1525 = vpow2.f32 %v460_v10  ;;  %v1491_v10 = vpack.c.bf16 %v956_v9, %v955_v7 }
 0x289   :  { %1527 = vpow2.f32 %v462_v11 }
 0x292   :  { %v1526_v12 = vpop.eup %1525 }
 0x293   :  { %v1528_v14 = vpop.eup %1527  ;;  %467 = vperm.xlu1 %1519, %v1526_v12  }
 0x294   :  { %470 = vperm.xlu0 %1520, %v1528_v14  }
 0x298   :  { %126 = vperm.xlu0 %1520, %v122_v18  }
 0x312   :  { %v468_v20 = vpop.permute.xlu1 %467 }
 0x313   :  { %v471_v21 = vpop.permute.xlu0 %470  ;;  %v475_v23 = vrot.slane %v468_v20, %v1957_v50 }
 0x314   :  { %v479_v24 = vrot.slane %v471_v21, %v1957_v50 }
 0x316   :  { %v480_v25 = vsel %vm440_vm3, %v479_v24, %v475_v23 }
 0x317   :  { %v127_v26 = vpop.permute.xlu0 %126  ;;  %v482_v27 = vsel %vm443_vm4, %v480_v25, 0.0 }
 0x318   :  { %vm128_vm5 = vcmp.eq.s32.totalorder %v124_v48, %v127_v26  ;;  %483 = vadd.xlane.f32.xlu1 %v482_v27  ;;  %v1223_v27 = vld [vmem:[#allocation2] ss:$0 sm:$0xff] }
 0x319   :  { %v1213_v28 = vsel %vm128_vm5, 1.0, %v1712_v1 }
 0x31a   :  { %1310 = vmatmul.mubr.msk.f32.vlgmr.msra.gmra.mrb[0].mxu0 %vm139_vm2, %v1213_v28 }
 0x31b   :  { %1343 = vmatpush3.msra.mxu0 %v1915_v15  ;;  %1344 = vmatprep.mubr.msk.f32.mxu0 %vm1711_vm0, %v1712_v1 }
 0x31c   :  { %1347 = vmatprep.subr.mxu0 %v1712_v1 }
 0x3a5   :  { %v484_v32 = vpop.xlane.xlu1 %483 }
 0x3a6   :  { %v489_v15 = vrot.slane %v484_v32, %v1950_v36  ;;  %v493_v33 = vrot.slane %v484_v32, %v454_v4  ;;  %v831_v36 = vld [vmem:[%s2150_s9 + $0x10] sm:$0xff]  ;;  %v1488_v4 = vpack.c.bf16 %v954_v3, %v953_v63 }
 0x3a7   :  { %v1479_v45 = vpack.c.bf16 %v832_v42, %v831_v36  ;;  %v945_v36 = vld [vmem:[#allocation7] sm:$0xff]  ;;  %v946_v42 = vld [vmem:[#allocation7 + $0x8] sm:$0xff] }
 0x3a8   :  { %1529 = vrcp.f32 %v489_v15 }
 0x3a9   :  { %1531 = vrcp.f32 %v493_v33 }
 0x3b2   :  { %v1530_v34 = vpop.eup %1529 }
 0x3b3   :  { %v1532_v35 = vpop.eup %1531  ;;  %v497_v37 = vmul.f32 %v1530_v34, %v1526_v12 }
 0x3b4   :  { %v499_v38 = vmul.f32 %v1532_v35, %v1528_v14  ;;  %v1224_v14 = vld [vmem:[#allocation5] ss:$0 sm:$0xff] }
 0x3b5   :  { %502 = vperm.xlu0 %1520, %v497_v37  }
 0x3b6   :  { %583 = vperm.xlu1 %1519, %v499_v38  }
 0x3ed   :  { %v2026_v43 = vpop.f32.mrb[0].mxu0 }
 0x3ee   :  { %v1311_v44 = vpop.f32.mrb[1].mxu0  ;;  %1376 = vmatmul.mubr.msk.f32.vlgmr.msra.gmra.mrb[4].mxu1 %vm747_vm6, %v2026_v43 }
 0x3ef   :  { %1477 = vmatpush3.bf16.msra.mxu1 %v1476_v41  ;;  %1386 = vmatprep.mubr.msk.f32.mxu1 %vm1711_vm0, %v1712_v1  ;;  %v947_v44 = vld [vmem:[#allocation7 + $0x10] sm:$0xff] }
 0x3f0   :  { %1478 = vmatprep.subr.bf16.mxu1 %v1710_v0 }
 0x3f3   :  { %1480 = vmatpush3.bf16.msra.mxu1 %v1479_v45  ;;  %v1494_v45 = vpack.c.bf16 %v946_v42, %v945_v36 }
 0x3f4   :  { %1481 = vmatprep.subr.bf16.mxu1 %v1710_v0 }
 0x3f6   :  { %1387 = vmatmul.mubr.msk.f32.vlgmr.msra.gmra.mrb[6].mxu1 %vm224_vm1, %v1910_v13 }
 0x3f7   :  { %1405 = vmatprep.mubr.msk.f32.mxu1 %vm1711_vm0, %v1712_v1 }
 0x434   :  { %v503_v46 = vpop.permute.xlu0 %502 }
 0x435   :  { %v507_v47 = vrot.slane %v503_v46, %v1957_v50  ;;  %v584_v48 = vpop.permute.xlu1 %583  ;;  %v948_v46 = vld [vmem:[#allocation7 + $0x18] sm:$0xff] }
 0x436   :  { %v588_v49 = vrot.slane %v584_v48, %v1957_v50  ;;  %v950_v50 = vld [vmem:[%s2154_s13 + $0x8] sm:$0xff] }
 0x437   :  { %1345 = vmatmul.mubr.msk.f32.vlgmr.msra.gmra.mrb[2].mxu0 %vm508_vm7, %v507_v47  ;;  %v1497_v47 = vpack.c.bf16 %v948_v46, %v947_v44 }
 0x438   :  { %1348 = vmatpush3.msra.mxu0 %v1936_v22  ;;  %1349 = vmatprep.mubr.msk.f32.mxu0 %vm1711_vm0, %v1712_v1  ;;  %v949_v22 = vld [vmem:[%s2154_s13] sm:$0xff]  ;;  %s1716_s13 = smov 96  }
 0x439   :  { %1460 = vmatprep.subr.bf16.mxu0 %v1710_v0  ;;  %v1482_v56 = vpack.c.bf16 %v950_v50, %v949_v22 }
 0x43b   :  { %1350 = vmatmul.mubr.msk.f32.vlgmr.msra.gmra.mrb[4].mxu0 %vm508_vm7, %v588_v49  ;;  %1483 = vmatpush3.bf16.msra.mxu1 %v1482_v56  ;;  %v1500_v56 = vpack.c.bf16 %v1100_v55, %v1099_v54 }
 0x43c   :  { %1368 = vmatprep.mubr.msk.f32.mxu0 %vm1711_vm0, %v1712_v1  ;;  %1462 = vmatpush3.bf16.msra.mxu0 %v1461_v53 }
 0x43d   :  { %1463 = vmatprep.subr.bf16.mxu0 %v1710_v0  ;;  %1484 = vmatprep.subr.bf16.mxu1 %v1710_v0 }
 0x43f   :  { %1486 = vmatpush3.bf16.msra.mxu1 %v1485_v60 }
 0x440   :  { %1465 = vmatpush3.bf16.msra.mxu0 %v1464_v59  ;;  %1487 = vmatprep.subr.bf16.mxu1 %v1710_v0 }
 0x441   :  { %1466 = vmatprep.subr.bf16.mxu0 %v1710_v0 }
 0x443   :  { %1489 = vmatpush3.bf16.msra.mxu1 %v1488_v4 }
 0x444   :  { %1468 = vmatpush3.bf16.msra.mxu0 %v1467_v2  ;;  %1490 = vmatprep.subr.bf16.mxu1 %v1710_v0 }
 0x445   :  { %1469 = vmatprep.subr.bf16.mxu0 %v1710_v0 }
 0x447   :  { %1492 = vmatpush3.bf16.msra.mxu1 %v1491_v10 }
 0x448   :  { %1471 = vmatpush3.bf16.msra.mxu0 %v1470_v8 }
 0x449   :  { %1493 = vmatprep.subr.bf16.mxu0 %v1710_v0 }
 0x4c1   :  { %v817_v11 = vpop.f32.mrb[4].mxu1 }
 0x4c2   :  { %v1377_v12 = vpop.f32.mrb[5].mxu1 }
 0x4c9   :  { %v906_v16 = vpop.f32.mrb[6].mxu1 }
 0x4ca   :  { %v907_v17 = vadd.f32 %v1224_v14, %v906_v16  ;;  %v1388_v18 = vpop.f32.mrb[7].mxu1 }
 0x4cc   :  { %918 = vrot.lane.b32.xlu0 %v907_v17, %s1715_s8 }
 0x50a   :  { %v577_v19 = vpop.f32.mrb[2].mxu0 }
 0x50b   :  { %v1346_v20 = vpop.f32.mrb[3].mxu0 }
 0x50e   :  { %v657_v21 = vpop.f32.mrb[4].mxu0 }
 0x50f   :  { %v673_v23 = vrot.slane %v657_v21, 7  ;;  %v1351_v24 = vpop.f32.mrb[5].mxu0 }
 0x511   :  { %v674_v25 = vsel %vm440_vm3, %v673_v23, %v577_v19 }
 0x512   :  { %1369 = vmatmul.mubr.msk.f32.vlgmr.msra.gmra.mrb[6].mxu0 %vm139_vm2, %v674_v25  ;;  %1406 = vmatmul.mubr.msk.f32.vlgmr.msra.gmra.mrb[8].mxu1 %vm139_vm2, %v674_v25 }
 0x513   :  { %1416 = vmatprep.mubr.msk.f32.mxu0 %vm1711_vm0, %v1712_v1  ;;  %1495 = vmatpush3.bf16.msra.mxu0 %v1494_v45 }
 0x514   :  { %1496 = vmatprep.subr.bf16.mxu0 %v1710_v0 }
 0x517   :  { %1498 = vmatpush3.bf16.msra.mxu0 %v1497_v47 }
 0x518   :  { %1499 = vmatprep.subr.bf16.mxu0 %v1710_v0 }
 0x53e   :  { %v919_v37 = vpop.permute.xlu0 %918 }
 0x5e5   :  { %v743_v26 = vpop.f32.mrb[6].mxu0  ;;  %v2106_v28 = vpop.f32.mrb[8].mxu1 }
 0x5e6   :  { %v818_v29 = vadd.f32 %v817_v11, %v743_v26  ;;  %v1370_v30 = vpop.f32.mrb[7].mxu0  ;;  %v1407_v31 = vpop.f32.mrb[9].mxu1 }
 0x5e8   :  { %v828_v32 = vadd.f32 %v1223_v27, %v818_v29 }
 0x5ea   :  { %v910_v15 = vadd.f32 %v907_v17, %v828_v32 }
 0x5ec   :  { %v1226_v33 = vmul.f32 -1.442695, %v910_v15 }
 0x5ee   :  { %1533 = vpow2.f32 %v1226_v33 }
 0x5f8   :  { %v1534_v34 = vpop.eup %1533 }
 0x5f9   :  { %v914_v35 = vadd.f32 1.0, %v1534_v34 }
 0x5fb   :  { %1535 = vrcp.f32 %v914_v35 }
 0x605   :  { %v1536_v38 = vpop.eup %1535 }
 0x606   :  { %v921_v39 = vmul.f32 %v1536_v38, %v919_v37  ;;  %v928_v51 = vsub.f32 1.0, %v1536_v38 }
 0x608   :  { %923 = vrot.lane.b32.xlu0 %v921_v39, %s1715_s8 }
 0x67a   :  { %v924_v40 = vpop.permute.xlu0 %923 }
 0x67b   :  { %v926_v41 = vadd.f32 %v924_v40, %v828_v32 }
 0x67d   :  { %1537 = vtanh.f32 %v926_v41 }
 0x687   :  { %v1538_v48 = vpop.eup %1537 }
 0x688   :  { %930 = vrot.lane.b32.xlu0 %v1538_v48, %s1716_s13 }
 0x68c   :  { %934 = vrot.lane.b32.xlu0 %v1910_v13, %s1717_s0 }
 0x6fa   :  { %v931_v49 = vpop.permute.xlu0 %930 }
 0x6fb   :  { %v933_v22 = vmul.f32 %v931_v49, %v928_v51 }
 0x6fe   :  { %v935_v52 = vpop.permute.xlu0 %934 }
 0x6ff   :  { %v937_v53 = vmul.f32 %v1536_v38, %v935_v52 }
 0x701   :  { %v938_v50 = vadd.f32 %v937_v53, %v933_v22 }
 0x703   :  { %940 = vrot.lane.b32.xlu1 %v938_v50, %s1716_s13 }
 0x775   :  { %v941_v57 = vpop.permute.xlu1 %940 }
 0x776   :  { %1417 = vmatmul.mubr.msk.f32.vlgmr.msra.gmra.mrb[8].mxu0 %vm224_vm1, %v941_v57  ;;  %944 = vst.msk [vmem:[#allocation12] sm:$0x3] %vm943_vm8, %v941_v57 }
 0x777   :  { %1501 = vmatpush3.bf16.msra.mxu0 %v1500_v56  ;;  %1423 = vmatprep.mubr.msk.f32.mxu0 %vm1711_vm0, %v1712_v1 }
 0x77a   :  { %1424 = vmatmul.mubr.msk.f32.vlgmr.msra.gmra.mrb[10].mxu0 %vm747_vm6, %v2026_v43 }
 0x77b   :  { %1660 = shalt.err (!%p1657_p2)
}
 0x77c   :  { %s1661_s22 = scalar_lea.hbm %s2158_s17, 32 }
 0x77d   :  { %p1662_p3 = scmp.ne.s32.totalorder %s2158_s17, %s1661_s22  ;;  %p1665_p4 = scmp.lt.u32.totalorder %s1661_s22, %s2158_s17 }
 0x77f   :  { %p1667_p5 = pnand %p1665_p4, %p1662_p3 }
 0x781   :  { %1670 = shalt.err (!%p1667_p5)
}
 0x782   :  { %1201 = dma.vmem_to_hbm [thread:$0]  %s1199_s25, 32, %s2158_s17, [#allocation13]   ;;  %v1230_v58 = vld [vmem:[#allocation10] ss:$0 sm:$0xff]  ;;  %vm1180_vm9 = vcmask 517120  }
 0x783   :  { %s1719_s14 = smov [#allocation11]  }
 0x784   :  { %s1188_s5 = sshll.u32 %s1719_s14, 4  ;;  %s1189_s5 = int_to_ptr.vmem [resolvable:$true] %s1188_s5 }
 0x785   :  { %s1671_s23 = scalar_lea.vmem %s1189_s5, 32  ;;  %p1676_p7 = scmp.lt.s32.totalorder %s1189_s5, %s1189_s5 }
 0x786   :  { %p1672_p6 = scmp.ne.s32.totalorder %s1189_s5, %s1671_s23  ;;  %p1677_p8 = scmp.lt.s32.totalorder %s1671_s23, %s1671_s23 }
 0x788   :  { %p1678_p9 = por %p1677_p8, %p1676_p7 }
 0x78a   :  { %p1679_p10 = pnand %p1678_p9, %p1672_p6 }
 0x849   :  { %v1095_v0 = vpop.f32.mrb[8].mxu0 }
 0x84a   :  { %v1096_v1 = vadd.f32 %v1095_v0, %v2106_v28  ;;  %v1418_v13 = vpop.f32.mrb[9].mxu0 }
 0x84d   :  { %v1167_v43 = vpop.f32.mrb[10].mxu0 }
 0x84e   :  { %v1171_v59 = vadd.f32 %v1167_v43, %v1096_v1  ;;  %v1425_v60 = vpop.f32.mrb[11].mxu0 }
 0x850   :  { %v1179_v61 = vadd.f32 %v1230_v58, %v1171_v59 }
 0x852   :  { %1181 = vst.msk [vmem:[#allocation11] sm:$0x3] %vm1180_vm9, %v1179_v61 }
 0x853   :  { %1682 = shalt.err (!%p1679_p10)
}
 0x854   :  { %s1683_s2 = scalar_lea.hbm %s2157_s16, 32 }
 0x855   :  { %p1684_p11 = scmp.ne.s32.totalorder %s2157_s16, %s1683_s2  ;;  %p1687_p12 = scmp.lt.u32.totalorder %s1683_s2, %s2157_s16 }
 0x857   :  { %p1689_p13 = pnand %p1687_p12, %p1684_p11 }
 0x859   :  { %1692 = shalt.err (!%p1689_p13)
}
 0x85a   :  { %1191 = dma.vmem_to_hbm [thread:$0]  %s1189_s5, 32, %s2157_s16, [#allocation4]  }
 0x85b   :  { %1699 = dma.done.wait [#allocation4], 32  }
 0x85c   :  { %1700 = vsyncadd [#allocation4], 4294967264 }
 0x85d   :  { %1701 = dma.done.wait [#allocation13], 32  }
 0x85e   :  { %1702 = vsyncadd [#allocation13], 4294967264 }
 0x85f   :  { %1208 = vsyncpa [#allocation3], 1 }
 0x860   :  { %1209 = vsyncpa [#allocation6], 1 }
 0x861   :  { %1210 = vsyncpa [#allocation9], 1 }
 0x862   :  { %1211 = vsyncpa [#allocation4], 1 }
 0x863   :  { %1212 = vsyncpa [#allocation13], 1 }

</bundles_post_ra>
